<compile_context>
chip_gen: v7x
topology: tpu7x:2x2x1
jax: 0.10.0
libtpu: 0.0.40
codegen_flags: <defaults>
</compile_context>

<pallas_src>
import functools

import numpy as np

import jax
import jax.numpy as jnp
from jax.experimental import pallas as pl
from jax.experimental.pallas import tpu as pltpu


def _round_up(v, m):
    return -(-v // m) * m


def _dfl_kernel(x_ref, bc_ref, coef_ref, seg_ref, anc_ref, out_ref, *,
                num_bins, eps, anchors_per_row):
    """Fused DFL for `anchors_per_row` anchors packed per lane-row.

    x_ref    : (TMR, row_w)  logits, row_w = anchors_per_row * 4 * num_bins
    bc_ref   : (TMR, bc_k)   [boxes (4/anchor), centers (2/anchor), zero pad]
    coef_ref : (bc_k, row_w) box/center -> per-lane target distance
    seg_ref  : (row_w, 4*anchors_per_row) 16-bin segment indicator (0/1)
    anc_ref  : (row_w, anchors_per_row)   0.25 * anchor indicator
    out_ref  : (TMR, anchors_per_row)     per-anchor DFL (mean over 4 sides fused)
    """
    x = x_ref[...].astype(jnp.float32)
    bc = bc_ref[...]
    coef = coef_ref[...]
    seg = seg_ref[...]
    anc = anc_ref[...]

    # Fused box->distribution + expansion to each 16-bin lane segment, then the
    # reference's clamp_(0, num_bins - 1 - eps).
    t = jnp.dot(bc, coef, preferred_element_type=jnp.float32)
    t = jnp.clip(t, 0.0, num_bins - 1 - eps)

    # "Hat" interpolation weight: equals w_left at bin floor(t), w_right at
    # bin ceil(t) and 0 elsewhere, so the two one-hot gathers of the reference
    # collapse into a single weighted reduce (also exact when t is integral).
    bins = jax.lax.broadcasted_iota(jnp.int32, x.shape, 1) % num_bins
    w = jnp.maximum(1.0 - jnp.abs(bins.astype(jnp.float32) - t), 0.0)

    # Segmented (per 16 bins) log-sum-exp.  Subtracting the shared row max is
    # mathematically exact for LSE; a whole 16-bin segment only underflows if
    # its logits sit > ~80 below the row max, which detection heads never do.
    m = jnp.max(x, axis=-1, keepdims=True)
    e = jnp.exp(x - m)
    s_seg = jnp.dot(e, seg, preferred_element_type=jnp.float32)   # (TMR, 4*apr)
    z = jnp.log(s_seg)

    # mean over the 4 sides of each anchor (0.25 factors live here / in `anc`)
    lse_q = 0.25 * jnp.concatenate(
        [jnp.sum(z[:, 4 * p:4 * p + 4], axis=-1, keepdims=True)
         for p in range(anchors_per_row)], axis=-1)                # (TMR, apr)
    g_q = jnp.dot(w * x, anc, preferred_element_type=jnp.float32)  # (TMR, apr)

    out_ref[...] = (lse_q - g_q + m).astype(out_ref.dtype)


def _dfl_constants(num_bins, anchors_per_row):
    """Constant matrices for the in-kernel MXU helpers."""
    C = 4 * num_bins
    row_w = anchors_per_row * C
    bc_k = _round_up(6 * anchors_per_row, 8)
    coef = np.zeros((bc_k, row_w), np.float32)
    seg = np.zeros((row_w, 4 * anchors_per_row), np.float32)
    anc = np.zeros((row_w, anchors_per_row), np.float32)
    for j in range(row_w):
        p = j // C                         # anchor within the row
        s = (j // num_bins) % 4            # box side (l, t, r, b)
        box = 4 * p
        ctr = 4 * anchors_per_row + 2 * p
        if s == 0:
            coef[ctr + 0, j], coef[box + 0, j] = 1.0, -1.0   # cx - x1
        elif s == 1:
            coef[ctr + 1, j], coef[box + 1, j] = 1.0, -1.0   # cy - y1
        elif s == 2:
            coef[box + 2, j], coef[ctr + 0, j] = 1.0, -1.0   # x2 - cx
        else:
            coef[box + 3, j], coef[ctr + 1, j] = 1.0, -1.0   # y2 - cy
        seg[j, j // num_bins] = 1.0
        anc[j, p] = 0.25
    return coef, seg, anc, bc_k, row_w


def distribution_focal_loss(predicted_distribution, assigned_boxes, cell_centers,
                            foreground_mask, num_dfl_bins=16, eps=1e-3,
                            tile_rows=2048):
    """Matches DistributionFocalLoss.forward: per-foreground-anchor loss (N,)."""
    B, A, C = predicted_distribution.shape
    assert C == 4 * num_dfl_bins
    N = B * A

    apr = max(1, 128 // C)                       # anchors packed per lane-row
    coef, seg, anc, bc_k, row_w = _dfl_constants(num_dfl_bins, apr)

    rows = -(-N // apr)
    tmr = min(tile_rows, _round_up(rows, 8))
    rows_pad = _round_up(rows, tmr)
    pad_anchors = rows_pad * apr - N

    logits = predicted_distribution.reshape(N, C)         # native dtype, no upcast
    boxes = assigned_boxes.astype(jnp.float32).reshape(N, 4)
    centers = cell_centers.astype(jnp.float32)
    if centers.ndim == 2:
        centers = jnp.broadcast_to(centers[None], (B, A, 2))
    centers = centers.reshape(N, 2)

    if pad_anchors:
        logits = jnp.concatenate(
            [logits, jnp.zeros((pad_anchors, C), logits.dtype)], axis=0)
        boxes = jnp.concatenate(
            [boxes, jnp.zeros((pad_anchors, 4), jnp.float32)], axis=0)
        centers = jnp.concatenate(
            [centers, jnp.zeros((pad_anchors, 2), jnp.float32)], axis=0)

    logits = logits.reshape(rows_pad, row_w)
    bc = jnp.concatenate([boxes.reshape(rows_pad, 4 * apr),
                          centers.reshape(rows_pad, 2 * apr)], axis=-1)
    if bc_k != 6 * apr:
        bc = jnp.concatenate(
            [bc, jnp.zeros((rows_pad, bc_k - 6 * apr), jnp.float32)], axis=-1)

    kernel = functools.partial(_dfl_kernel, num_bins=num_dfl_bins, eps=eps,
                               anchors_per_row=apr)
    out = pl.pallas_call(
        kernel,
        out_shape=jax.ShapeDtypeStruct((rows_pad, apr), jnp.float32),
        grid_spec=pltpu.PrefetchScalarGridSpec(
            num_scalar_prefetch=0,
            grid=(rows_pad // tmr,),
            in_specs=[
                pl.BlockSpec((tmr, row_w), lambda i: (i, 0)),      # logits
                pl.BlockSpec((tmr, bc_k), lambda i: (i, 0)),       # boxes+centers
                pl.BlockSpec((bc_k, row_w), lambda i: (0, 0)),     # coef (const)
                pl.BlockSpec((row_w, 4 * apr), lambda i: (0, 0)),  # seg  (const)
                pl.BlockSpec((row_w, apr), lambda i: (0, 0)),      # anc  (const)
            ],
            out_specs=pl.BlockSpec((tmr, apr), lambda i: (i, 0)),
        ),
        compiler_params=pltpu.CompilerParams(
            dimension_semantics=("parallel",),
            vmem_limit_bytes=32 * 1024 * 1024),
    )(logits, bc, jnp.asarray(coef), jnp.asarray(seg), jnp.asarray(anc))

    loss_dense = out.reshape(-1)[:N].reshape(B, A)         # per-anchor DFL
    # Boolean foreground selection has a data-dependent shape, so it stays in
    # eager JAX outside the kernel (under jit, use a masked sum instead).
    return loss_dense[foreground_mask]


def _reference_dfl(pred, boxes, centers, mask, num_bins, eps):
    """Pure-JAX port of the PyTorch module, for verification."""
    if centers.ndim == 2:
        centers = jnp.broadcast_to(centers[None], boxes[..., :2].shape)
    dist = jnp.concatenate([centers - boxes[..., :2], boxes[..., 2:] - centers],
                           axis=-1)                                     # (B, A, 4)
    B, A, _ = pred.shape
    logits = pred.astype(jnp.float32).reshape(B, A, 4, num_bins)
    t = jnp.clip(dist.astype(jnp.float32), 0.0, num_bins - 1 - eps)
    tl = jnp.floor(t)
    tr = jnp.ceil(t)
    wl = tr - t
    wr = 1.0 - wl
    logp = jax.nn.log_softmax(logits, axis=-1)
    gl = jnp.take_along_axis(logp, tl.astype(jnp.int32)[..., None], axis=-1)[..., 0]
    gr = jnp.take_along_axis(logp, tr.astype(jnp.int32)[..., None], axis=-1)[..., 0]
    loss = -(wl * gl + wr * gr)                                         # (B, A, 4)
    return loss.mean(axis=-1)[mask]


if __name__ == "__main__":
    key = jax.random.PRNGKey(0)
    k_pred, k_off, k_mask = jax.random.split(key, 3)

    B, A, num_bins = 2, 64, 16            # A = 8x8 feature map of cells
    predicted_distribution = jax.random.normal(
        k_pred, (B, A, 4 * num_bins), dtype=jnp.float32)

    # cell centers on an 8x8 grid (stride 1, +0.5 offset)
    xs, ys = jnp.meshgrid(jnp.arange(8, dtype=jnp.float32) + 0.5,
                          jnp.arange(8, dtype=jnp.float32) + 0.5)
    cell_centers = jnp.stack([xs.reshape(-1), ys.reshape(-1)], axis=-1)  # (A, 2)

    # assigned boxes: centers +/- extents (quantized to 1/16) so distances are in [0, 6]
    extents = jnp.round(
        jax.random.uniform(k_off, (B, A, 4), minval=0.0, maxval=6.0) * 16.0) / 16.0
    cc = jnp.broadcast_to(cell_centers[None], (B, A, 2))
    assigned_boxes = jnp.concatenate(
        [cc - extents[..., :2], cc + extents[..., 2:]], axis=-1)         # (B, A, 4)

    foreground_mask = jax.random.uniform(k_mask, (B, A)) > 0.5           # (B, A) bool

    loss = distribution_focal_loss(
        predicted_distribution, assigned_boxes, cell_centers,
        foreground_mask, num_dfl_bins=num_bins, eps=1e-3)
    jax.block_until_ready(loss)

    ref = _reference_dfl(predicted_distribution, assigned_boxes, cell_centers,
                         foreground_mask, num_bins, 1e-3)
    assert loss.shape == ref.shape == (int(foreground_mask.sum()),)
    assert jnp.all(jnp.isfinite(loss))
    max_err = float(jnp.max(jnp.abs(loss - ref))) if loss.size else 0.0
    assert max_err < 5e-2, f"max abs error vs reference: {max_err}"
    print("KERNEL_OK")
</pallas_src>

<mosaic_0001>
module attributes {stable_mosaic.version = 11 : i64} {
  func.func @_dfl_kernel(%arg0: i32, %arg1: memref<64x128xf32, #tpu.memory_space<vmem>>, %arg2: memref<64x16xf32, #tpu.memory_space<vmem>>, %arg3: memref<16x128xf32, #tpu.memory_space<vmem>>, %arg4: memref<128x8xf32, #tpu.memory_space<vmem>>, %arg5: memref<128x2xf32, #tpu.memory_space<vmem>>, %arg6: memref<64x2xf32, #tpu.memory_space<vmem>>) attributes {dimension_semantics = [#tpu.dimension_semantics<parallel>], iteration_bounds = array<i64: 1>, scalar_prefetch = 0 : i64, scratch_operands = 0 : i64, tpu.core_type = #tpu.core_type<tc>, window_params = [{transform_indices = @transform_0, window_bounds = array<i64: 64, 128>}, {transform_indices = @transform_1, window_bounds = array<i64: 64, 16>}, {pipeline_mode = #tpu.pipeline_mode<synchronous>, transform_indices = @transform_2, window_bounds = array<i64: 16, 128>}, {pipeline_mode = #tpu.pipeline_mode<synchronous>, transform_indices = @transform_3, window_bounds = array<i64: 128, 8>}, {pipeline_mode = #tpu.pipeline_mode<synchronous>, transform_indices = @transform_4, window_bounds = array<i64: 128, 2>}, {transform_indices = @transform_5, window_bounds = array<i64: 64, 2>}]} {
    %c0 = arith.constant 0 : index
    %c0_0 = arith.constant 0 : index
    %0 = vector.load %arg1[%c0, %c0_0] : memref<64x128xf32, #tpu.memory_space<vmem>>, vector<64x128xf32>
    %c0_1 = arith.constant 0 : index
    %c0_2 = arith.constant 0 : index
    %1 = vector.load %arg2[%c0_1, %c0_2] : memref<64x16xf32, #tpu.memory_space<vmem>>, vector<64x16xf32>
    %c0_3 = arith.constant 0 : index
    %c0_4 = arith.constant 0 : index
    %2 = vector.load %arg3[%c0_3, %c0_4] : memref<16x128xf32, #tpu.memory_space<vmem>>, vector<16x128xf32>
    %c0_5 = arith.constant 0 : index
    %c0_6 = arith.constant 0 : index
    %3 = vector.load %arg4[%c0_5, %c0_6] : memref<128x8xf32, #tpu.memory_space<vmem>>, vector<128x8xf32>
    %c0_7 = arith.constant 0 : index
    %c0_8 = arith.constant 0 : index
    %4 = vector.load %arg5[%c0_7, %c0_8] : memref<128x2xf32, #tpu.memory_space<vmem>>, vector<128x2xf32>
    %cst = arith.constant dense<0.000000e+00> : vector<64x128xf32>
    %5 = tpu.matmul %1, %2, %cst {dimension_numbers = #tpu.dot_dimension_numbers<[1], [0], [0], [1], [0, 0, 1, 1], [], []>} : vector<64x16xf32>, vector<16x128xf32>, vector<64x128xf32> -> vector<64x128xf32>
    %cst_9 = arith.constant 0.000000e+00 : f32
    %cst_10 = arith.constant 1.499900e+01 : f32
    %6 = vector.broadcast %cst_9 : f32 to vector<64x128xf32>
    %7 = arith.maximumf %6, %5 : vector<64x128xf32>
    %8 = vector.broadcast %cst_10 : f32 to vector<64x128xf32>
    %9 = arith.minimumf %8, %7 : vector<64x128xf32>
    %10 = tpu.iota {dimensions = array<i32: 1>} : vector<64x128xi32>
    %c16_i32 = arith.constant 16 : i32
    %c0_i32 = arith.constant 0 : i32
    %11 = arith.cmpi eq, %c16_i32, %c0_i32 : i32
    %c1_i32 = arith.constant 1 : i32
    %12 = arith.select %11, %c1_i32, %c16_i32 : i32
    %13 = vector.broadcast %12 : i32 to vector<64x128xi32>
    %14 = arith.remsi %10, %13 : vector<64x128xi32>
    %c0_i32_11 = arith.constant 0 : i32
    %15 = vector.broadcast %c0_i32_11 : i32 to vector<64x128xi32>
    %16 = arith.cmpi ne, %14, %15 : vector<64x128xi32>
    %c0_i32_12 = arith.constant 0 : i32
    %17 = vector.broadcast %c0_i32_12 : i32 to vector<64x128xi32>
    %18 = arith.cmpi slt, %14, %17 : vector<64x128xi32>
    %c0_i32_13 = arith.constant 0 : i32
    %19 = arith.cmpi slt, %12, %c0_i32_13 : i32
    %20 = vector.broadcast %19 : i1 to vector<64x128xi1>
    %21 = vector.broadcast %20 : vector<64x128xi1> to vector<64x128xi1>
    %22 = arith.xori %18, %21 : vector<64x128xi1>
    %23 = arith.andi %22, %16 : vector<64x128xi1>
    %24 = vector.broadcast %12 : i32 to vector<64x128xi32>
    %25 = arith.addi %14, %24 : vector<64x128xi32>
    %26 = arith.select %23, %25, %14 : vector<64x128xi1>, vector<64x128xi32>
    %27 = arith.sitofp %26 : vector<64x128xi32> to vector<64x128xf32>
    %28 = arith.subf %27, %9 : vector<64x128xf32>
    %29 = math.absf %28 : vector<64x128xf32>
    %cst_14 = arith.constant 1.000000e+00 : f32
    %30 = vector.broadcast %cst_14 : f32 to vector<64x128xf32>
    %31 = arith.subf %30, %29 : vector<64x128xf32>
    %cst_15 = arith.constant 0.000000e+00 : f32
    %32 = vector.broadcast %cst_15 : f32 to vector<64x128xf32>
    %33 = arith.maximumf %31, %32 : vector<64x128xf32>
    %cst_16 = arith.constant dense<0xFF800000> : vector<64xf32>
    %34 = vector.multi_reduction <maximumf>, %0, %cst_16 [1] : vector<64x128xf32> to vector<64xf32>
    %35 = vector.shape_cast %34 : vector<64xf32> to vector<64x1xf32>
    %36 = vector.broadcast %35 : vector<64x1xf32> to vector<64x128xf32>
    %37 = arith.subf %0, %36 : vector<64x128xf32>
    %38 = math.exp %37 : vector<64x128xf32>
    %cst_17 = arith.constant dense<0.000000e+00> : vector<64x8xf32>
    %39 = tpu.matmul %38, %3, %cst_17 {dimension_numbers = #tpu.dot_dimension_numbers<[1], [0], [0], [1], [0, 0, 1, 1], [], []>} : vector<64x128xf32>, vector<128x8xf32>, vector<64x8xf32> -> vector<64x8xf32>
    %40 = math.log %39 : vector<64x8xf32>
    %41 = vector.extract_strided_slice %40 {offsets = [0, 0], sizes = [64, 4], strides = [1, 1]} : vector<64x8xf32> to vector<64x4xf32>
    %cst_18 = arith.constant dense<0.000000e+00> : vector<64xf32>
    %42 = vector.multi_reduction <add>, %41, %cst_18 [1] : vector<64x4xf32> to vector<64xf32>
    %43 = vector.shape_cast %42 : vector<64xf32> to vector<64x1xf32>
    %44 = vector.extract_strided_slice %40 {offsets = [0, 4], sizes = [64, 4], strides = [1, 1]} : vector<64x8xf32> to vector<64x4xf32>
    %cst_19 = arith.constant dense<0.000000e+00> : vector<64xf32>
    %45 = vector.multi_reduction <add>, %44, %cst_19 [1] : vector<64x4xf32> to vector<64xf32>
    %46 = vector.shape_cast %45 : vector<64xf32> to vector<64x1xf32>
    %47 = tpu.concatenate %43, %46 in 1 : vector<64x1xf32>, vector<64x1xf32> -> vector<64x2xf32>
    %cst_20 = arith.constant 2.500000e-01 : f32
    %48 = vector.broadcast %cst_20 : f32 to vector<64x2xf32>
    %49 = arith.mulf %48, %47 : vector<64x2xf32>
    %50 = arith.mulf %33, %0 : vector<64x128xf32>
    %cst_21 = arith.constant dense<0.000000e+00> : vector<64x2xf32>
    %51 = tpu.matmul %50, %4, %cst_21 {dimension_numbers = #tpu.dot_dimension_numbers<[1], [0], [0], [1], [0, 0, 1, 1], [], []>} : vector<64x128xf32>, vector<128x2xf32>, vector<64x2xf32> -> vector<64x2xf32>
    %52 = arith.subf %49, %51 : vector<64x2xf32>
    %53 = vector.broadcast %35 : vector<64x1xf32> to vector<64x2xf32>
    %54 = arith.addf %52, %53 : vector<64x2xf32>
    %c0_22 = arith.constant 0 : index
    %c0_23 = arith.constant 0 : index
    %55 = vector.load %arg6[%c0_22, %c0_23] : memref<64x2xf32, #tpu.memory_space<vmem>>, vector<64x2xf32>
    tpu.vector_store %arg6[%c0_22, %c0_23], %54 {strides = array<i32>} : memref<64x2xf32, #tpu.memory_space<vmem>>, vector<64x2xf32>,
    return
  }
  func.func @transform_0(%arg0: i32) -> (i32, i32) {
    %c0_i32 = arith.constant 0 : i32
    %c0_i32_0 = arith.constant 0 : i32
    return %arg0, %c0_i32 : i32, i32
  }
  func.func @transform_1(%arg0: i32) -> (i32, i32) {
    %c0_i32 = arith.constant 0 : i32
    %c0_i32_0 = arith.constant 0 : i32
    return %arg0, %c0_i32 : i32, i32
  }
  func.func @transform_2(%arg0: i32) -> (i32, i32) {
    %c0_i32 = arith.constant 0 : i32
    %c0_i32_0 = arith.constant 0 : i32
    %c0_i32_1 = arith.constant 0 : i32
    return %c0_i32, %c0_i32_0 : i32, i32
  }
  func.func @transform_3(%arg0: i32) -> (i32, i32) {
    %c0_i32 = arith.constant 0 : i32
    %c0_i32_0 = arith.constant 0 : i32
    %c0_i32_1 = arith.constant 0 : i32
    return %c0_i32, %c0_i32_0 : i32, i32
  }
  func.func @transform_4(%arg0: i32) -> (i32, i32) {
    %c0_i32 = arith.constant 0 : i32
    %c0_i32_0 = arith.constant 0 : i32
    %c0_i32_1 = arith.constant 0 : i32
    return %c0_i32, %c0_i32_0 : i32, i32
  }
  func.func @transform_5(%arg0: i32) -> (i32, i32) {
    %c0_i32 = arith.constant 0 : i32
    %c0_i32_0 = arith.constant 0 : i32
    return %arg0, %c0_i32 : i32, i32
  }
}

</mosaic_0001>

<bundles_post_ra>
// kernel: tpu_custom_call.1
= control target key start
LH: loop header
LB: loop body
LE: loop exit
PB: predicated region body
PF: predicated region fallthrough
CT: control target
= control target key end

     0   :  { %vm70_vm0 = vcmask 130048   ;;  %vm424_vm1 = vcmask 31744   ;;  %vm505_vm2 = vcmask 7168   ;;  %vm651_vm3 = vcmask 15360   ;;  %s1262_s0 = inlined_call_operand.vmem [shape: f32[64,128], index: 0, kind: input, shape index: {}]   ;;  %s1263_s3 = inlined_call_operand.vmem [shape: f32[128,8], index: 3, kind: input, shape index: {}]   ;;  %s1264_s2 = inlined_call_operand.vmem [shape: f32[16,128], index: 2, kind: input, shape index: {}]   ;;  %s1265_s1 = inlined_call_operand.vmem [shape: f32[64,16], index: 1, kind: input, shape index: {}]   ;;  %s1266_s4 = inlined_call_operand.vmem [shape: f32[128,2], index: 4, kind: input, shape index: {}]   ;;  %s1267_s5 = inlined_call_operand.vmem [shape: f32[64,2], index: 5, kind: output, shape index: {}]  }
   0x1   :  { %v969_v0 = vld [vmem:[%s1262_s0] sm:$0xff]  ;;  %v974_v1 = vld [vmem:[%s1262_s0 + $0x10] sm:$0xff]  ;;  %v981_v2 = vld [vmem:[%s1262_s0 + $0x8] sm:$0xff] }
   0x2   :  { %263 = vmax.xlane.f32.xlu0 %v969_v0  ;;  %267 = vmax.xlane.f32.xlu1 %v974_v1  ;;  %v986_v3 = vld [vmem:[%s1262_s0 + $0x18] sm:$0xff]  ;;  %v38_v4 = vld [vmem:[%s1263_s3] sm:$0xff]  ;;  %v39_v5 = vld [vmem:[%s1263_s3 + $0x8] sm:$0xff] }
   0x3   :  { %v40_v6 = vld [vmem:[%s1263_s3 + $0x10] sm:$0xff]  ;;  %v41_v7 = vld [vmem:[%s1263_s3 + $0x18] sm:$0xff]  ;;  %v838_v8 = vpack.c.bf16 %v39_v5, %v38_v4  ;;  %v42_v10 = vld [vmem:[%s1263_s3 + $0x20] sm:$0xff] }
   0x4   :  { %v842_v9 = vpack.c.bf16 %v41_v7, %v40_v6  ;;  %v43_v11 = vld [vmem:[%s1263_s3 + $0x28] sm:$0xff]  ;;  %v1011_v12 = vld [vmem:[%s1262_s0 + $0x20] sm:$0xff]  ;;  %v44_v15 = vld [vmem:[%s1263_s3 + $0x30] sm:$0xff] }
   0x5   :  { %v1016_v13 = vld [vmem:[%s1262_s0 + $0x28] sm:$0xff]  ;;  %839 = vmatprep.subr.bf16.mxu1 %v838_v8  ;;  %v846_v14 = vpack.c.bf16 %v43_v11, %v42_v10  ;;  %v45_v16 = vld [vmem:[%s1263_s3 + $0x38] sm:$0xff]  ;;  %v1029_v17 = vld [vmem:[%s1262_s0 + $0x30] sm:$0xff] }
   0x6   :  { %265 = vmax.xlane.f32.xlu0 %v981_v2  ;;  %269 = vmax.xlane.f32.xlu1 %v986_v3  ;;  %v1034_v18 = vld [vmem:[%s1262_s0 + $0x38] sm:$0xff]  ;;  %v850_v19 = vpack.c.bf16 %v45_v16, %v44_v15  ;;  %v46_v20 = vld [vmem:[%s1263_s3 + $0x40] sm:$0xff]  ;;  %v47_v21 = vld [vmem:[%s1263_s3 + $0x48] sm:$0xff] }
   0x7   :  { %841 = vmatpush3.bf16.msra.mxu1 %v838_v8  ;;  %v854_v22 = vpack.c.bf16 %v47_v21, %v46_v20  ;;  %v48_v23 = vld [vmem:[%s1263_s3 + $0x50] sm:$0xff]  ;;  %v49_v24 = vld [vmem:[%s1263_s3 + $0x58] sm:$0xff]  ;;  %v50_v26 = vld [vmem:[%s1263_s3 + $0x60] sm:$0xff] }
   0x8   :  { %843 = vmatprep.subr.bf16.mxu1 %v842_v9  ;;  %v858_v25 = vpack.c.bf16 %v49_v24, %v48_v23  ;;  %v51_v27 = vld [vmem:[%s1263_s3 + $0x68] sm:$0xff]  ;;  %v52_v29 = vld [vmem:[%s1263_s3 + $0x70] sm:$0xff]  ;;  %v53_v30 = vld [vmem:[%s1263_s3 + $0x78] sm:$0xff] }
   0x9   :  { %v862_v28 = vpack.c.bf16 %v51_v27, %v50_v26  ;;  %v866_v31 = vpack.c.bf16 %v53_v30, %v52_v29  ;;  %v36_v32 = vld [vmem:[%s1264_s2] sm:$0xff]  ;;  %v37_v33 = vld [vmem:[%s1264_s2 + $0x8] sm:$0xff]  ;;  %v30_v37 = vld [vmem:[%s1265_s1 + $0x10] sm:$0xff] }
   0xa   :  { %271 = vmax.xlane.f32.xlu0 %v1011_v12  ;;  %273 = vmax.xlane.f32.xlu1 %v1016_v13  ;;  %v28_v34 = vld [vmem:[%s1265_s1] sm:$0xff]  ;;  %v834_v35 = vpack.c.bf16 %v37_v33, %v36_v32  ;;  %v29_v36 = vld [vmem:[%s1265_s1 + $0x8] sm:$0xff]  ;;  %v31_v38 = vld [vmem:[%s1265_s1 + $0x18] sm:$0xff] }
   0xb   :  { %845 = vmatpush3.bf16.msra.mxu1 %v842_v9  ;;  %734 = vmatprep.mubr.msk.f32.mxu0 %vm70_vm0, %v28_v34  ;;  %v32_v39 = vld [vmem:[%s1265_s1 + $0x20] sm:$0xff]  ;;  %v33_v40 = vld [vmem:[%s1265_s1 + $0x28] sm:$0xff]  ;;  %v34_v41 = vld [vmem:[%s1265_s1 + $0x30] sm:$0xff] }
   0xc   :  { %847 = vmatprep.subr.bf16.mxu1 %v846_v14  ;;  %835 = vmatprep.subr.bf16.mxu0 %v834_v35  ;;  %v35_v42 = vld [vmem:[%s1265_s1 + $0x38] sm:$0xff]  ;;  %v55_v20 = vld [vmem:[%s1266_s4 + $0x8] sm:$0xff]  ;;  %v58_v27 = vld [vmem:[%s1266_s4 + $0x20] sm:$0xff] }
   0xd   :  { %837 = vmatpush3.bf16.msra.mxu0 %v834_v35  ;;  %v57_v23 = vld [vmem:[%s1266_s4 + $0x18] sm:$0xff]  ;;  %v60_v35 = vld [vmem:[%s1266_s4 + $0x30] sm:$0xff] }
   0xe   :  { %275 = vmax.xlane.f32.xlu0 %v1029_v17  ;;  %277 = vmax.xlane.f32.xlu1 %v1034_v18 }
   0xf   :  { %849 = vmatpush3.bf16.msra.mxu1 %v846_v14 }
  0x10   :  { %851 = vmatprep.subr.bf16.mxu1 %v850_v19  ;;  %735 = vmatmul.mubr.msk.f32.vlgmr.msra.gmra.mrb[0].mxu0 %vm70_vm0, %v29_v36  ;;  %v61_v36 = vld [vmem:[%s1266_s4 + $0x38] sm:$0xff] }
  0x11   :  { %737 = vmatprep.mubr.msk.f32.mxu0 %vm70_vm0, %v30_v37 }
  0x13   :  { %853 = vmatpush3.bf16.msra.mxu1 %v850_v19  ;;  %v54_v19 = vld [vmem:[%s1266_s4] sm:$0xff] }
  0x14   :  { %855 = vmatprep.subr.bf16.mxu1 %v854_v22  ;;  %738 = vmatmul.mubr.msk.f32.gmra.mrb[2].mxu0 %vm70_vm0, %v31_v38  ;;  %v870_v21 = vpack.c.bf16 %v55_v20, %v54_v19 }
  0x15   :  { %740 = vmatprep.mubr.msk.f32.mxu0 %vm70_vm0, %v32_v39 }
  0x16   :  { %871 = vmatprep.subr.bf16.mxu0 %v870_v21 }
  0x17   :  { %857 = vmatpush3.bf16.msra.mxu1 %v854_v22  ;;  %v56_v22 = vld [vmem:[%s1266_s4 + $0x10] sm:$0xff]  ;;  %873 = vmatpush3.bf16.msra.mxu0 %v870_v21 }
  0x18   :  { %859 = vmatprep.subr.bf16.mxu1 %v858_v25  ;;  %741 = vmatmul.mubr.msk.f32.gmra.mrb[4].mxu0 %vm70_vm0, %v33_v40  ;;  %v874_v26 = vpack.c.bf16 %v57_v23, %v56_v22 }
  0x19   :  { %743 = vmatprep.mubr.msk.f32.mxu0 %vm70_vm0, %v34_v41 }
  0x1a   :  { %875 = vmatprep.subr.bf16.mxu0 %v874_v26 }
  0x1b   :  { %861 = vmatpush3.bf16.msra.mxu1 %v858_v25  ;;  %v216_v25 = vlaneseq  ;;  %877 = vmatpush3.bf16.msra.mxu0 %v874_v26 }
  0x1c   :  { %863 = vmatprep.subr.bf16.mxu1 %v862_v28  ;;  %744 = vmatmul.mubr.msk.f32.gmra.mrb[6].mxu0 %vm70_vm0, %v35_v42  ;;  %v882_v42 = vpack.c.bf16 %v61_v36, %v60_v35 }
  0x1d   :  { %v217_v30 = vand.u32 127, %v216_v25 }
  0x1f   :  { %865 = vmatpush3.bf16.msra.mxu1 %v862_v28  ;;  %v59_v28 = vld [vmem:[%s1266_s4 + $0x28] sm:$0xff]  ;;  %v222_v39 = vand.u32 15, %v217_v30 }
  0x20   :  { %867 = vmatprep.subr.bf16.mxu1 %v866_v31  ;;  %v878_v33 = vpack.c.bf16 %v59_v28, %v58_v27 }
  0x22   :  { %879 = vmatprep.subr.bf16.mxu0 %v878_v33 }
  0x23   :  { %869 = vmatpush3.bf16.msra.mxu1 %v866_v31  ;;  %881 = vmatpush3.bf16.msra.mxu0 %v878_v33  ;;  %v68_v33 = vld [vmem:[%s1266_s4 + $0x70] sm:$0xff] }
  0x24   :  { %883 = vmatprep.subr.bf16.mxu0 %v882_v42 }
  0x27   :  { %885 = vmatpush3.bf16.msra.mxu0 %v882_v42 }
  0x8f   :  { %v1100_v43 = vpop.xlane.xlu0 %263  ;;  %v1102_v44 = vpop.xlane.xlu1 %267 }
  0x90   :  { %v279_v45 = vsub.f32 %v969_v0, %v1100_v43  ;;  %v281_v46 = vsub.f32 %v974_v1, %v1102_v44 }
  0x92   :  { %v287_v47 = vmul.f32 1.442695, %v279_v45  ;;  %v291_v48 = vmul.f32 1.442695, %v281_v46  ;;  %v62_v45 = vld [vmem:[%s1266_s4 + $0x40] sm:$0xff]  ;;  %v63_v46 = vld [vmem:[%s1266_s4 + $0x48] sm:$0xff] }
  0x93   :  { %v1108_v49 = vpop.xlane.xlu0 %265  ;;  %v1110_v50 = vpop.xlane.xlu1 %269 }
  0x94   :  { %v280_v51 = vsub.f32 %v981_v2, %v1108_v49  ;;  %v282_v52 = vsub.f32 %v986_v3, %v1110_v50  ;;  %903 = vpow2.f32 %v287_v47 }
  0x95   :  { %905 = vpow2.f32 %v291_v48  ;;  %v1162_v48 = vcvt.s32.f32 %v222_v39 }
  0x96   :  { %v289_v53 = vmul.f32 1.442695, %v280_v51  ;;  %v293_v54 = vmul.f32 1.442695, %v282_v52 }
  0x97   :  { %v1116_v55 = vpop.xlane.xlu0 %271  ;;  %v1118_v56 = vpop.xlane.xlu1 %273 }
  0x98   :  { %907 = vpow2.f32 %v289_v53  ;;  %v283_v57 = vsub.f32 %v1011_v12, %v1116_v55  ;;  %v284_v58 = vsub.f32 %v1016_v13, %v1118_v56  ;;  %v886_v53 = vpack.c.bf16 %v63_v46, %v62_v45 }
  0x99   :  { %909 = vpow2.f32 %v293_v54 }
  0x9a   :  { %v295_v59 = vmul.f32 1.442695, %v283_v57  ;;  %v297_v60 = vmul.f32 1.442695, %v284_v58  ;;  %v64_v57 = vld [vmem:[%s1266_s4 + $0x50] sm:$0xff]  ;;  %v65_v58 = vld [vmem:[%s1266_s4 + $0x58] sm:$0xff]  ;;  %887 = vmatprep.subr.bf16.mxu0 %v886_v53 }
  0x9b   :  { %v1124_v61 = vpop.xlane.xlu0 %275  ;;  %v1126_v62 = vpop.xlane.xlu1 %277  ;;  %889 = vmatpush3.bf16.msra.mxu0 %v886_v53 }
  0x9c   :  { %911 = vpow2.f32 %v295_v59  ;;  %v285_v63 = vsub.f32 %v1029_v17, %v1124_v61  ;;  %v286_v4 = vsub.f32 %v1034_v18, %v1126_v62 }
  0x9d   :  { %913 = vpow2.f32 %v297_v60 }
  0x9e   :  { %v299_v5 = vmul.f32 1.442695, %v285_v63  ;;  %v301_v6 = vmul.f32 1.442695, %v286_v4  ;;  %v904_v7 = vpop.eup %903 }
  0x9f   :  { %778 = vmatprep.mubr.f32.mxu1 %v904_v7  ;;  %v906_v8 = vpop.eup %905 }
  0xa0   :  { %915 = vpow2.f32 %v299_v5 }
  0xa1   :  { %917 = vpow2.f32 %v301_v6  ;;  %v890_v6 = vpack.c.bf16 %v65_v58, %v64_v57 }
  0xa2   :  { %v908_v9 = vpop.eup %907 }
  0xa3   :  { %779 = vmatmul.mubr.f32.vlgmr.msra.gmra.mrb[0].mxu1 %v908_v9  ;;  %v910_v10 = vpop.eup %909  ;;  %v67_v9 = vld [vmem:[%s1266_s4 + $0x68] sm:$0xff]  ;;  %891 = vmatprep.subr.bf16.mxu0 %v890_v6 }
  0xa4   :  { %781 = vmatprep.mubr.f32.mxu1 %v906_v8  ;;  %v66_v8 = vld [vmem:[%s1266_s4 + $0x60] sm:$0xff]  ;;  %893 = vmatpush3.bf16.msra.mxu0 %v890_v6 }
  0xa5   :  { %v894_v20 = vpack.c.bf16 %v67_v9, %v66_v8 }
  0xa6   :  { %v912_v11 = vpop.eup %911 }
  0xa7   :  { %782 = vmatmul.mubr.f32.gmra.mrb[2].mxu1 %v910_v10  ;;  %v914_v14 = vpop.eup %913  ;;  %895 = vmatprep.subr.bf16.mxu0 %v894_v20 }
  0xa8   :  { %784 = vmatprep.mubr.f32.mxu1 %v912_v11  ;;  %897 = vmatpush3.bf16.msra.mxu0 %v894_v20 }
  0xaa   :  { %v916_v15 = vpop.eup %915 }
  0xab   :  { %785 = vmatmul.mubr.f32.gmra.mrb[4].mxu1 %v914_v14  ;;  %v918_v16 = vpop.eup %917 }
  0xac   :  { %787 = vmatprep.mubr.f32.mxu1 %v916_v15 }
  0xaf   :  { %788 = vmatmul.mubr.f32.gmra.mrb[6].mxu1 %v918_v16 }
  0xe3   :  { %v736_v24 = vpop.f32.mrb[0].mxu0 }
  0xe4   :  { %v161_v29 = vpop.f32.mrb[1].mxu0  ;;  %v201_v38 = vmax.f32 %v736_v24, 0.0 }
  0xe5   :  { %v200_v41 = vmax.f32 %v161_v29, 0.0 }
  0xe6   :  { %v209_v47 = vmin.f32 %v201_v38, 14.999 }
  0xe7   :  { %v739_v31 = vpop.f32.mrb[2].mxu0  ;;  %v208_v51 = vmin.f32 %v200_v41, 14.999 }
  0xe8   :  { %v171_v32 = vpop.f32.mrb[3].mxu0  ;;  %v203_v54 = vmax.f32 %v739_v31, 0.0  ;;  %v232_v59 = vsub.f32 %v1162_v48, %v209_v47 }
  0xe9   :  { %v202_v52 = vmax.f32 %v171_v32, 0.0  ;;  %v231_v60 = vsub.f32 %v1162_v48, %v208_v51 }
  0xea   :  { %v211_v5 = vmin.f32 %v203_v54, 14.999  ;;  %v240_v10 = vand.u32 2147483647, %v232_v59 }
  0xeb   :  { %v742_v34 = vpop.f32.mrb[4].mxu0  ;;  %v210_v63 = vmin.f32 %v202_v52, 14.999  ;;  %v239_v11 = vand.u32 2147483647, %v231_v60 }
  0xec   :  { %v181_v37 = vpop.f32.mrb[5].mxu0  ;;  %v205_v7 = vmax.f32 %v742_v34, 0.0  ;;  %v234_v16 = vsub.f32 %v1162_v48, %v211_v5  ;;  %v248_v22 = vsub.f32 1.0, %v240_v10  ;;  %v69_v34 = vld [vmem:[%s1266_s4 + $0x78] sm:$0xff]  ;;  %s935_s4 = smov 124  }
  0xed   :  { %v204_v4 = vmax.f32 %v181_v37, 0.0  ;;  %v233_v14 = vsub.f32 %v1162_v48, %v210_v63  ;;  %v247_v23 = vsub.f32 1.0, %v239_v11  ;;  %v898_v39 = vpack.c.bf16 %v69_v34, %v68_v33 }
  0xee   :  { %v213_v19 = vmin.f32 %v205_v7, 14.999  ;;  %v242_v26 = vand.u32 2147483647, %v234_v16  ;;  %v256_v29 = vmax.f32 %v248_v22, 0.0 }
  0xef   :  { %v745_v40 = vpop.f32.mrb[6].mxu0  ;;  %v212_v15 = vmin.f32 %v204_v4, 14.999  ;;  %v241_v24 = vand.u32 2147483647, %v233_v14  ;;  %v255_v30 = vmax.f32 %v247_v23, 0.0  ;;  %899 = vmatprep.subr.bf16.mxu0 %v898_v39 }
  0xf0   :  { %v207_v21 = vmax.f32 %v745_v40, 0.0  ;;  %v236_v27 = vsub.f32 %v1162_v48, %v213_v19  ;;  %v250_v35 = vsub.f32 1.0, %v242_v26  ;;  %v191_v38 = vpop.f32.mrb[7].mxu0  ;;  %v523_v41 = vmul.f32 %v256_v29, %v981_v2  ;;  %901 = vmatpush3.bf16.msra.mxu0 %v898_v39 }
  0xf1   :  { %v235_v25 = vsub.f32 %v1162_v48, %v212_v15  ;;  %v249_v31 = vsub.f32 1.0, %v241_v24  ;;  %v206_v40 = vmax.f32 %v191_v38, 0.0  ;;  %v522_v47 = vmul.f32 %v255_v30, %v969_v0 }
  0xf2   :  { %v215_v28 = vmin.f32 %v207_v21, 14.999  ;;  %v244_v36 = vand.u32 2147483647, %v236_v27  ;;  %v258_v51 = vmax.f32 %v250_v35, 0.0 }
  0xf3   :  { %v243_v32 = vand.u32 2147483647, %v235_v25  ;;  %v257_v42 = vmax.f32 %v249_v31, 0.0  ;;  %v214_v46 = vmin.f32 %v206_v40, 14.999  ;;  %822 = vmatprep.mubr.f32.mxu0 %v522_v47 }
  0xf4   :  { %v238_v37 = vsub.f32 %v1162_v48, %v215_v28  ;;  %v252_v52 = vsub.f32 1.0, %v244_v36  ;;  %823 = vmatmul.mubr.f32.vlgmr.msra.gmra.mrb[8].mxu0 %v523_v41  ;;  %v525_v63 = vmul.f32 %v258_v51, %v986_v3 }
  0xf5   :  { %v251_v45 = vsub.f32 1.0, %v243_v32  ;;  %v237_v54 = vsub.f32 %v1162_v48, %v214_v46  ;;  %v524_v59 = vmul.f32 %v257_v42, %v974_v1 }
  0xf6   :  { %v246_v53 = vand.u32 2147483647, %v238_v37  ;;  %v260_v60 = vmax.f32 %v252_v52, 0.0 }
  0xf7   :  { %v259_v57 = vmax.f32 %v251_v45, 0.0  ;;  %v245_v58 = vand.u32 2147483647, %v237_v54  ;;  %825 = vmatprep.mubr.f32.mxu0 %v524_v59 }
  0xf8   :  { %v254_v2 = vsub.f32 1.0, %v246_v53  ;;  %826 = vmatmul.mubr.f32.gmra.mrb[10].mxu0 %v525_v63  ;;  %v527_v7 = vmul.f32 %v260_v60, %v1016_v13 }
  0xf9   :  { %v253_v4 = vsub.f32 1.0, %v245_v58  ;;  %v526_v0 = vmul.f32 %v259_v57, %v1011_v12 }
  0xfa   :  { %v262_v6 = vmax.f32 %v254_v2, 0.0 }
  0xfb   :  { %v261_v5 = vmax.f32 %v253_v4, 0.0  ;;  %828 = vmatprep.mubr.f32.mxu0 %v526_v0 }
  0xfc   :  { %829 = vmatmul.mubr.f32.gmra.mrb[12].mxu0 %v527_v7  ;;  %v529_v8 = vmul.f32 %v262_v6, %v1034_v18 }
  0xfd   :  { %v528_v48 = vmul.f32 %v261_v5, %v1029_v17 }
  0xff   :  { %831 = vmatprep.mubr.f32.mxu0 %v528_v48 }
 0x100   :  { %832 = vmatmul.mubr.f32.gmra.mrb[14].mxu0 %v529_v8 }
 0x176   :  { %v780_v1 = vpop.f32.mrb[0].mxu1 }
 0x177   :  { %919 = vlog2.f32 %v780_v1  ;;  %v369_v3 = vpop.f32.mrb[1].mxu1 }
 0x178   :  { %921 = vlog2.f32 %v369_v3 }
 0x17a   :  { %v783_v9 = vpop.f32.mrb[2].mxu1 }
 0x17b   :  { %923 = vlog2.f32 %v783_v9  ;;  %v379_v10 = vpop.f32.mrb[3].mxu1 }
 0x17c   :  { %925 = vlog2.f32 %v379_v10 }
 0x17e   :  { %v786_v12 = vpop.f32.mrb[4].mxu1 }
 0x17f   :  { %927 = vlog2.f32 %v786_v12  ;;  %v389_v11 = vpop.f32.mrb[5].mxu1 }
 0x180   :  { %929 = vlog2.f32 %v389_v11 }
 0x181   :  { %v920_v13 = vpop.eup %919 }
 0x182   :  { %v922_v14 = vpop.eup %921  ;;  %v411_v15 = vmul.f32 0.6931472, %v920_v13  ;;  %v789_v17 = vpop.f32.mrb[6].mxu1 }
 0x183   :  { %v409_v16 = vmul.f32 0.6931472, %v922_v14  ;;  %931 = vlog2.f32 %v789_v17  ;;  %v399_v18 = vpop.f32.mrb[7].mxu1 }
 0x184   :  { %933 = vlog2.f32 %v399_v18  ;;  %459 = vrot.lane.b32.xlu1 %v411_v15, %s935_s4  ;;  %v428_v33 = vsel %vm424_vm1, %v411_v15, 0.0 }
 0x185   :  { %v924_v19 = vpop.eup %923  ;;  %457 = vrot.lane.b32.xlu0 %v409_v16, %s935_s4  ;;  %v425_v31 = vsel %vm424_vm1, %v409_v16, 0.0 }
 0x186   :  { %v415_v20 = vmul.f32 0.6931472, %v924_v19  ;;  %v926_v21 = vpop.eup %925 }
 0x187   :  { %v413_v24 = vmul.f32 0.6931472, %v926_v21 }
 0x188   :  { %463 = vrot.lane.b32.xlu1 %v415_v20, %s935_s4  ;;  %v434_v34 = vsel %vm424_vm1, %v415_v20, 0.0 }
 0x189   :  { %v928_v22 = vpop.eup %927  ;;  %v431_v32 = vsel %vm424_vm1, %v413_v24, 0.0 }
 0x18a   :  { %v930_v23 = vpop.eup %929  ;;  %v419_v26 = vmul.f32 0.6931472, %v928_v22 }
 0x18b   :  { %v417_v25 = vmul.f32 0.6931472, %v930_v23 }
 0x18c   :  { %461 = vrot.lane.b32.xlu1 %v413_v24, %s935_s4  ;;  %v440_v35 = vsel %vm424_vm1, %v419_v26, 0.0 }
 0x18d   :  { %v932_v27 = vpop.eup %931  ;;  %465 = vrot.lane.b32.xlu0 %v417_v25, %s935_s4  ;;  %v437_v36 = vsel %vm424_vm1, %v417_v25, 0.0 }
 0x18e   :  { %v934_v28 = vpop.eup %933  ;;  %v423_v30 = vmul.f32 0.6931472, %v932_v27 }
 0x18f   :  { %v421_v29 = vmul.f32 0.6931472, %v934_v28 }
 0x190   :  { %467 = vrot.lane.b32.xlu1 %v419_v26, %s935_s4  ;;  %v446_v37 = vsel %vm424_vm1, %v423_v30, 0.0 }
 0x191   :  { %469 = vrot.lane.b32.xlu0 %v421_v29, %s935_s4  ;;  %v443_v38 = vsel %vm424_vm1, %v421_v29, 0.0 }
 0x194   :  { %471 = vrot.lane.b32.xlu1 %v423_v30, %s935_s4 }
 0x1b0   :  { %426 = vadd.xlane.f32.xlu0 %v425_v31 }
 0x1b4   :  { %432 = vadd.xlane.f32.xlu0 %v431_v32 }
 0x1b8   :  { %429 = vadd.xlane.f32.xlu1 %v428_v33  ;;  %435 = vadd.xlane.f32.xlu0 %v434_v34 }
 0x1bc   :  { %441 = vadd.xlane.f32.xlu1 %v440_v35  ;;  %438 = vadd.xlane.f32.xlu0 %v437_v36 }
 0x1c0   :  { %447 = vadd.xlane.f32.xlu1 %v446_v37  ;;  %444 = vadd.xlane.f32.xlu0 %v443_v38 }
 0x1c7   :  { %v824_v63 = vpop.f32.mrb[8].mxu0 }
 0x1c8   :  { %v596_v4 = vpop.f32.mrb[9].mxu0 }
 0x1cb   :  { %v827_v5 = vpop.f32.mrb[10].mxu0 }
 0x1cc   :  { %v606_v0 = vpop.f32.mrb[11].mxu0 }
 0x1cf   :  { %v830_v6 = vpop.f32.mrb[12].mxu0 }
 0x1d0   :  { %v616_v7 = vpop.f32.mrb[13].mxu0 }
 0x1d3   :  { %v833_v48 = vpop.f32.mrb[14].mxu0 }
 0x1d4   :  { %v626_v8 = vpop.f32.mrb[15].mxu0 }
 0x1f6   :  { %v460_v39 = vpop.permute.xlu1 %459 }
 0x1f7   :  { %v458_v40 = vpop.permute.xlu0 %457  ;;  %v484_v41 = vsel %vm424_vm1, %v460_v39, 0.0 }
 0x1f8   :  { %485 = vadd.xlane.f32.xlu1 %v484_v41  ;;  %v481_v42 = vsel %vm424_vm1, %v458_v40, 0.0 }
 0x1f9   :  { %482 = vadd.xlane.f32.xlu0 %v481_v42 }
 0x1fa   :  { %v464_v45 = vpop.permute.xlu1 %463 }
 0x1fb   :  { %v490_v46 = vsel %vm424_vm1, %v464_v45, 0.0 }
 0x1fc   :  { %491 = vadd.xlane.f32.xlu1 %v490_v46 }
 0x1fe   :  { %v462_v47 = vpop.permute.xlu1 %461 }
 0x1ff   :  { %v487_v51 = vsel %vm424_vm1, %v462_v47, 0.0  ;;  %v466_v52 = vpop.permute.xlu0 %465 }
 0x200   :  { %488 = vadd.xlane.f32.xlu0 %v487_v51  ;;  %v493_v53 = vsel %vm424_vm1, %v466_v52, 0.0 }
 0x202   :  { %v468_v54 = vpop.permute.xlu1 %467 }
 0x203   :  { %v496_v57 = vsel %vm424_vm1, %v468_v54, 0.0  ;;  %v470_v58 = vpop.permute.xlu0 %469 }
 0x204   :  { %497 = vadd.xlane.f32.xlu1 %v496_v57  ;;  %494 = vadd.xlane.f32.xlu0 %v493_v53  ;;  %v499_v59 = vsel %vm424_vm1, %v470_v58, 0.0 }
 0x206   :  { %v472_v60 = vpop.permute.xlu1 %471 }
 0x207   :  { %v502_v2 = vsel %vm424_vm1, %v472_v60, 0.0 }
 0x208   :  { %503 = vadd.xlane.f32.xlu1 %v502_v2  ;;  %500 = vadd.xlane.f32.xlu0 %v499_v59 }
 0x23d   :  { %v427_v1 = vpop.xlane.xlu0 %426 }
 0x241   :  { %v433_v3 = vpop.xlane.xlu0 %432 }
 0x245   :  { %v430_v9 = vpop.xlane.xlu1 %429  ;;  %v436_v10 = vpop.xlane.xlu0 %435 }
 0x249   :  { %v442_v12 = vpop.xlane.xlu1 %441  ;;  %v439_v11 = vpop.xlane.xlu0 %438 }
 0x24d   :  { %v448_v13 = vpop.xlane.xlu1 %447  ;;  %v445_v14 = vpop.xlane.xlu0 %444 }
 0x285   :  { %v486_v15 = vpop.xlane.xlu1 %485 }
 0x286   :  { %v507_v17 = vsel %vm505_vm2, %v430_v9, %v486_v15  ;;  %v483_v16 = vpop.xlane.xlu0 %482 }
 0x287   :  { %v515_v18 = vmul.f32 0.25, %v507_v17  ;;  %v506_v19 = vsel %vm505_vm2, %v427_v1, %v483_v16 }
 0x288   :  { %v514_v20 = vmul.f32 0.25, %v506_v19 }
 0x289   :  { %v636_v21 = vsub.f32 %v515_v18, %v824_v63  ;;  %v492_v22 = vpop.xlane.xlu1 %491 }
 0x28a   :  { %v509_v23 = vsel %vm505_vm2, %v436_v10, %v492_v22  ;;  %v635_v24 = vsub.f32 %v514_v20, %v596_v4 }
 0x28b   :  { %v644_v25 = vadd.f32 %v636_v21, %v1108_v49  ;;  %v517_v26 = vmul.f32 0.25, %v509_v23 }
 0x28c   :  { %v643_v27 = vadd.f32 %v635_v24, %v1100_v43 }
 0x28d   :  { %653 = vst.msk [vmem:[%s1267_s5 + $0x8] sm:$0xff] %vm651_vm3, %v644_v25  ;;  %v638_v28 = vsub.f32 %v517_v26, %v827_v5  ;;  %v489_v29 = vpop.xlane.xlu0 %488 }
 0x28e   :  { %652 = vst.msk [vmem:[%s1267_s5] sm:$0xff] %vm651_vm3, %v643_v27  ;;  %v508_v30 = vsel %vm505_vm2, %v433_v3, %v489_v29 }
 0x28f   :  { %v646_v31 = vadd.f32 %v638_v28, %v1110_v50  ;;  %v516_v49 = vmul.f32 0.25, %v508_v30 }
 0x291   :  { %655 = vst.msk [vmem:[%s1267_s5 + $0x18] sm:$0xff] %vm651_vm3, %v646_v31  ;;  %v637_v43 = vsub.f32 %v516_v49, %v606_v0  ;;  %v498_v32 = vpop.xlane.xlu1 %497  ;;  %v495_v33 = vpop.xlane.xlu0 %494 }
 0x292   :  { %v511_v34 = vsel %vm505_vm2, %v442_v12, %v498_v32  ;;  %v510_v35 = vsel %vm505_vm2, %v439_v11, %v495_v33 }
 0x293   :  { %v645_v36 = vadd.f32 %v637_v43, %v1102_v44  ;;  %v519_v37 = vmul.f32 0.25, %v511_v34  ;;  %v518_v38 = vmul.f32 0.25, %v510_v35 }
 0x295   :  { %654 = vst.msk [vmem:[%s1267_s5 + $0x10] sm:$0xff] %vm651_vm3, %v645_v36  ;;  %v640_v50 = vsub.f32 %v519_v37, %v830_v6  ;;  %v639_v39 = vsub.f32 %v518_v38, %v616_v7  ;;  %v504_v40 = vpop.xlane.xlu1 %503  ;;  %v501_v41 = vpop.xlane.xlu0 %500 }
 0x296   :  { %v513_v42 = vsel %vm505_vm2, %v448_v13, %v504_v40  ;;  %v512_v45 = vsel %vm505_vm2, %v445_v14, %v501_v41 }
 0x297   :  { %v648_v46 = vadd.f32 %v640_v50, %v1118_v56  ;;  %v647_v47 = vadd.f32 %v639_v39, %v1116_v55  ;;  %v521_v44 = vmul.f32 0.25, %v513_v42  ;;  %v520_v51 = vmul.f32 0.25, %v512_v45 }
 0x299   :  { %657 = vst.msk [vmem:[%s1267_s5 + $0x28] sm:$0xff] %vm651_vm3, %v648_v46  ;;  %656 = vst.msk [vmem:[%s1267_s5 + $0x20] sm:$0xff] %vm651_vm3, %v647_v47  ;;  %v642_v52 = vsub.f32 %v521_v44, %v833_v48  ;;  %v641_v53 = vsub.f32 %v520_v51, %v626_v8 }
 0x29b   :  { %v650_v54 = vadd.f32 %v642_v52, %v1126_v62  ;;  %v649_v56 = vadd.f32 %v641_v53, %v1124_v61 }
 0x29d   :  { %659 = vst.msk [vmem:[%s1267_s5 + $0x38] sm:$0xff] %vm651_vm3, %v650_v54  ;;  %658 = vst.msk [vmem:[%s1267_s5 + $0x30] sm:$0xff] %vm651_vm3, %v649_v56 }

</bundles_post_ra>
